<compile_context>
chip_gen: v5e
topology: v5e:2x2
jax: 0.10.0
libtpu: 0.0.40
codegen_flags: <defaults>
</compile_context>

<pallas_src>
import functools
import math

import jax
import jax.numpy as jnp
from jax.experimental import pallas as pl
from jax.experimental.pallas import tpu as pltpu

_TM_MAX = 512                       # destination-row tile
_TK_MAX = 1024                      # adjacency-column (source node) tile
_H_RESIDENT_BUDGET = 24 * 1024 * 1024   # bytes allowed for (double-buffered) resident H
_VMEM_LIMIT_BYTES = 48 * 1024 * 1024    # safe on v5e/v6e (128 MiB) and v7x (64 MiB)


def _round_up(x, m):
    return ((x + m - 1) // m) * m


def _sage_gcn_layer_kernel(nnz_ref, adj_ref, h_ref, invdeg_ref, *rest,
                           apply_relu, fuse_fc, h_resident, tk):
    if fuse_fc:
        w_ref, b_ref, out_ref, acc_ref = rest
    else:
        b_ref, out_ref, acc_ref = rest

    i = pl.program_id(0)
    k = pl.program_id(1)
    nk = pl.num_programs(1)

    @pl.when(k == 0)
    def _init():
        acc_ref[...] = jnp.zeros_like(acc_ref)

    # Skip the MXU pass entirely for all-zero A_hat tiles (scalar-prefetched nnz table).
    @pl.when(nnz_ref[i * nk + k] > 0)
    def _accum():
        a = adj_ref[...].astype(jnp.bfloat16)      # int8 (0/1) -> bf16 upcast, VPU-side
        if h_resident:
            start = pl.multiple_of(k * tk, tk)
            h = h_ref[pl.ds(start, tk), :]         # slice resident H for this k tile
        else:
            h = h_ref[...]                         # streamed (tk, feat) tile
        acc_ref[...] += jnp.dot(a, h, preferred_element_type=jnp.float32)

    @pl.when(k == nk - 1)
    def _finalize():
        h_neigh = acc_ref[...] * invdeg_ref[...]   # hoisted 1/(in_degree+1)
        if fuse_fc:
            # fc_neigh in bf16 while the row tile is still in VMEM
            rst = jnp.dot(h_neigh.astype(jnp.bfloat16), w_ref[...],
                          preferred_element_type=jnp.float32) + b_ref[...]
        else:
            # W was applied before aggregation (fc-first reorder); just bias here
            rst = h_neigh + b_ref[...]
        if apply_relu:
            rst = jnp.maximum(rst, 0.0)
        out_ref[...] = rst.astype(out_ref.dtype)


def sage_conv_gcn(nnz, adj_hat_i8, h_bf16, inv_deg, w_bf16, b_f32, *,
                  apply_relu, fuse_fc, out_dtype, tm, tk, h_resident_budget):
    """One SAGEConv(aggregator_type='gcn') layer as a tiled Pallas call.

    nnz        : (row_tiles * k_tiles,) int32   per-tile nonzero counts of A_hat
    adj_hat_i8 : (Np, Np) int8                  adjacency + identity, zero-padded
    h_bf16     : (Np, Fp) bf16                  node features (padded to mult of 128)
    inv_deg    : (Np, 1)  f32                   1 / (in_degree + 1)
    w_bf16     : (Fp, Fo) bf16 or None          fc_neigh weight (None if fc applied before)
    b_f32      : (1, Fo)  f32                   fc_neigh bias
    """
    n_pad = adj_hat_i8.shape[0]
    feat_p = h_bf16.shape[1]
    fout_p = b_f32.shape[1]
    row_tiles, k_tiles = n_pad // tm, n_pad // tk

    # Keep H resident when its (double-buffered) footprint fits the budget.
    h_resident = 2 * n_pad * feat_p * 2 <= h_resident_budget

    kernel = functools.partial(_sage_gcn_layer_kernel, apply_relu=apply_relu,
                               fuse_fc=fuse_fc, h_resident=h_resident, tk=tk)

    in_specs = [
        pl.BlockSpec((tm, tk), lambda i, k, nnz_ref: (i, k)),            # A_hat tile (int8)
        (pl.BlockSpec((n_pad, feat_p), lambda i, k, nnz_ref: (0, 0))     # H resident
         if h_resident else
         pl.BlockSpec((tk, feat_p), lambda i, k, nnz_ref: (k, 0))),      # H streamed
        pl.BlockSpec((tm, 1), lambda i, k, nnz_ref: (i, 0)),             # inv_deg row tile
    ]
    inputs = [adj_hat_i8, h_bf16, inv_deg]
    if fuse_fc:
        in_specs.append(pl.BlockSpec((feat_p, fout_p), lambda i, k, nnz_ref: (0, 0)))  # W
        inputs.append(w_bf16)
    in_specs.append(pl.BlockSpec((1, fout_p), lambda i, k, nnz_ref: (0, 0)))           # b
    inputs.append(b_f32)

    return pl.pallas_call(
        kernel,
        out_shape=jax.ShapeDtypeStruct((n_pad, fout_p), out_dtype),
        grid_spec=pltpu.PrefetchScalarGridSpec(
            num_scalar_prefetch=1,
            grid=(row_tiles, k_tiles),
            in_specs=in_specs,
            out_specs=pl.BlockSpec((tm, fout_p), lambda i, k, nnz_ref: (i, 0)),
            scratch_shapes=[pltpu.VMEM((tm, feat_p), jnp.float32)],      # f32 accumulator
        ),
        compiler_params=pltpu.CompilerParams(
            dimension_semantics=("parallel", "arbitrary"),
            vmem_limit_bytes=_VMEM_LIMIT_BYTES),
    )(nnz, *inputs)


def init_gcn_params(key, n_layers, in_feats, n_hidden, output_dim):
    """Deterministic parameter init mirroring GCN.__init__ layer shapes."""
    dims = [in_feats] + [n_hidden] * (n_layers - 1) + [output_dim]
    params = []
    for i in range(n_layers):
        key, kw, kb = jax.random.split(key, 3)
        fan_in, fan_out = dims[i], dims[i + 1]
        scale = 1.0 / jnp.sqrt(jnp.float32(fan_in))
        w = jax.random.uniform(kw, (fan_in, fan_out), jnp.float32, -scale, scale)
        b = jax.random.uniform(kb, (fan_out,), jnp.float32, -scale, scale)
        params.append((w, b))
    return params


def gcn_forward(adj, features, params, h_per_layer=False,
                h_resident_budget=_H_RESIDENT_BUDGET):
    """Mirrors GCN.forward: returns last `h` if h_per_layer else the hidden_rep list.

    adj[dst, src] = 1 means an edge src -> dst, so row sums of A_hat give in_degree+1
    (the DGL SAGEConv 'gcn' normalization). Use a symmetric adj for undirected graphs.
    """
    n = features.shape[0]
    n_layers = len(params)

    # pad N only to a lane multiple; pick tm/tk as divisors of n_pad
    n_pad = _round_up(n, 128)
    tm = math.gcd(_TM_MAX, n_pad)
    tk = math.gcd(_TK_MAX, n_pad)
    row_tiles, k_tiles = n_pad // tm, n_pad // tk

    # A_hat = adj + I (self term folded in), padded; stored as int8 (0/1 is exact)
    adj_hat = adj.astype(jnp.float32) + jnp.eye(n, dtype=jnp.float32)
    adj_hat = jnp.pad(adj_hat, ((0, n_pad - n), (0, n_pad - n)))
    inv_deg = 1.0 / jnp.maximum(jnp.sum(adj_hat, axis=1, keepdims=True), 1.0)
    adj_hat_i8 = adj_hat.astype(jnp.int8)

    # per-(row-tile, k-tile) nonzero counts -> scalar-prefetch table to skip empty tiles
    nnz = jnp.sum(adj_hat.reshape(row_tiles, tm, k_tiles, tk) != 0,
                  axis=(1, 3)).astype(jnp.int32).reshape(-1)

    # first-layer features: pad rows to n_pad, feature dim to multiple of 128, bf16
    f0 = features.shape[1]
    f0_p = _round_up(f0, 128)
    h_pad = jnp.pad(features.astype(jnp.float32),
                    ((0, n_pad - n), (0, f0_p - f0))).astype(jnp.bfloat16)

    hidden_rep = [features]
    for i, (w, b) in enumerate(params):
        # TODO(synk): dropout between layers (p > 0) is identity at inference; not applied.
        fin, fout = w.shape
        fin_p, fout_p = _round_up(fin, 128), _round_up(fout, 128)
        w_p = jnp.pad(w, ((0, fin_p - fin), (0, fout_p - fout))).astype(jnp.bfloat16)
        b_p = jnp.pad(b, ((0, fout_p - fout),)).reshape(1, fout_p).astype(jnp.float32)

        activation = i != n_layers - 1        # last layer has activation=None
        last = i == n_layers - 1
        fuse_fc = fout_p >= fin_p             # if fc shrinks the padded width, apply first
        if fuse_fc:
            feats = h_pad
        else:
            # out = (A_hat @ (H @ W)) * inv_deg + b  ==  ((A_hat @ H) * inv_deg) @ W + b
            feats = jnp.dot(h_pad, w_p,
                            preferred_element_type=jnp.float32).astype(jnp.bfloat16)

        out_dtype = jnp.float32 if last else jnp.bfloat16   # bf16 between layers
        h_pad = sage_conv_gcn(nnz, adj_hat_i8, feats, inv_deg,
                              w_p if fuse_fc else None, b_p,
                              apply_relu=activation, fuse_fc=fuse_fc,
                              out_dtype=out_dtype, tm=tm, tk=tk,
                              h_resident_budget=h_resident_budget)
        hidden_rep.append(h_pad[:n, :fout].astype(jnp.float32))

    if h_per_layer:
        return hidden_rep[-1]
    return hidden_rep


def gcn_reference(adj, features, params):
    """Pure-JAX reference mirroring the kernel's dtype strategy and fc-first reorder."""
    n = features.shape[0]
    n_layers = len(params)
    adj_hat = adj.astype(jnp.float32) + jnp.eye(n, dtype=jnp.float32)
    inv_deg = 1.0 / jnp.sum(adj_hat, axis=1, keepdims=True)
    h = features.astype(jnp.float32)
    outs = [features]
    for i, (w, b) in enumerate(params):
        fin_p, fout_p = _round_up(w.shape[0], 128), _round_up(w.shape[1], 128)
        if fout_p >= fin_p:
            agg = jnp.dot(adj_hat.astype(jnp.bfloat16), h.astype(jnp.bfloat16),
                          preferred_element_type=jnp.float32)
            h = jnp.dot((agg * inv_deg).astype(jnp.bfloat16), w.astype(jnp.bfloat16),
                        preferred_element_type=jnp.float32) + b
        else:
            hw = jnp.dot(h.astype(jnp.bfloat16), w.astype(jnp.bfloat16),
                         preferred_element_type=jnp.float32).astype(jnp.bfloat16)
            agg = jnp.dot(adj_hat.astype(jnp.bfloat16), hw,
                          preferred_element_type=jnp.float32)
            h = agg * inv_deg + b
        if i != n_layers - 1:
            h = jnp.maximum(h, 0.0)
        outs.append(h)
    return outs


if __name__ == "__main__":
    key = jax.random.PRNGKey(0)

    # ---- Test 1: small graph, fused fc path, resident H, single-tile grid ----
    N, in_feats, n_hidden, output_dim, n_layers = 16, 8, 32, 16, 3
    k_adj, k_feat, k_params, k_adj2, k_feat2, k_params2 = jax.random.split(key, 6)

    a = (jax.random.uniform(k_adj, (N, N)) < 0.3).astype(jnp.float32)
    adj = jnp.maximum(a, a.T) * (1.0 - jnp.eye(N, dtype=jnp.float32))
    features = jax.random.normal(k_feat, (N, in_feats), jnp.float32)
    params = init_gcn_params(k_params, n_layers, in_feats, n_hidden, output_dim)

    hidden_rep = gcn_forward(adj, features, params, h_per_layer=False)
    hidden_rep = jax.block_until_ready(hidden_rep)
    ref = gcn_reference(adj, features, params)

    assert hidden_rep[-1].shape == (N, output_dim)
    assert hidden_rep[1].shape == (N, n_hidden)
    assert jnp.allclose(hidden_rep[1], ref[1], atol=2e-2, rtol=2e-2), (
        float(jnp.max(jnp.abs(hidden_rep[1] - ref[1]))))
    assert jnp.allclose(hidden_rep[-1], ref[-1], atol=2e-2, rtol=2e-2), (
        float(jnp.max(jnp.abs(hidden_rep[-1] - ref[-1]))))

    h_last = gcn_forward(adj, features, params, h_per_layer=True)
    h_last = jax.block_until_ready(h_last)
    assert h_last.shape == (N, output_dim)

    # ---- Test 2: larger sparse graph -> multi-tile grid, empty-tile skip, fc-first
    #      reorder on layer 0; run both with resident H and with forced H streaming. ----
    N2, in2, hid2, out2 = 300, 200, 32, 8
    a2 = (jax.random.uniform(k_adj2, (100, 100)) < 0.1).astype(jnp.float32)
    a2 = jnp.maximum(a2, a2.T) * (1.0 - jnp.eye(100, dtype=jnp.float32))
    adj2 = jnp.zeros((N2, N2), jnp.float32).at[:100, :100].set(a2)  # nodes 100..299 isolated
    features2 = jax.random.normal(k_feat2, (N2, in2), jnp.float32)
    params2 = init_gcn_params(k_params2, 2, in2, hid2, out2)

    ref2 = gcn_reference(adj2, features2, params2)
    for budget in (_H_RESIDENT_BUDGET, 0):   # resident-H and streamed-H code paths
        rep2 = gcn_forward(adj2, features2, params2, h_per_layer=False,
                           h_resident_budget=budget)
        rep2 = jax.block_until_ready(rep2)
        assert rep2[-1].shape == (N2, out2)
        assert jnp.allclose(rep2[-1], ref2[-1], atol=2e-2, rtol=2e-2), (
            float(jnp.max(jnp.abs(rep2[-1] - ref2[-1]))))

    print("KERNEL_OK")
</pallas_src>

<mosaic_0001>
module attributes {stable_mosaic.version = 11 : i64} {
  func.func @_sage_gcn_layer_kernel(%arg0: i32, %arg1: i32, %arg2: memref<1xi32, #tpu.memory_space<smem>>, %arg3: memref<128x128xi8, #tpu.memory_space<vmem>>, %arg4: memref<128x128xbf16, #tpu.memory_space<vmem>>, %arg5: memref<128x1xf32, #tpu.memory_space<vmem>>, %arg6: memref<128x128xbf16, #tpu.memory_space<vmem>>, %arg7: memref<1x128xf32, #tpu.memory_space<vmem>>, %arg8: memref<128x128xbf16, #tpu.memory_space<vmem>>, %arg9: memref<128x128xf32, #tpu.memory_space<vmem>>) attributes {dimension_semantics = [#tpu.dimension_semantics<parallel>, #tpu.dimension_semantics<arbitrary>], iteration_bounds = array<i64: 1, 1>, scalar_prefetch = 1 : i64, scratch_operands = 1 : i64, tpu.core_type = #tpu.core_type<tc>, window_params = [{transform_indices = @transform_0, window_bounds = array<i64: 128, 128>}, {pipeline_mode = #tpu.pipeline_mode<synchronous>, transform_indices = @transform_1, window_bounds = array<i64: 128, 128>}, {transform_indices = @transform_2, window_bounds = array<i64: 128, 1>}, {pipeline_mode = #tpu.pipeline_mode<synchronous>, transform_indices = @transform_3, window_bounds = array<i64: 128, 128>}, {pipeline_mode = #tpu.pipeline_mode<synchronous>, transform_indices = @transform_4, window_bounds = array<i64: 1, 128>}, {transform_indices = @transform_5, window_bounds = array<i64: 128, 128>}]} {
    %c0_i32 = arith.constant 0 : i32
    %0 = arith.cmpi eq, %arg1, %c0_i32 : i32
    %1 = arith.extui %0 : i1 to i32
    %c0_i32_0 = arith.constant 0 : i32
    %2 = arith.cmpi ne, %1, %c0_i32_0 : i32
    scf.if %2 {
      %cst = arith.constant 0.000000e+00 : f32
      %13 = vector.broadcast %cst : f32 to vector<128x128xf32>
      %c0 = arith.constant 0 : index
      %c0_5 = arith.constant 0 : index
      %14 = vector.load %arg9[%c0, %c0_5] : memref<128x128xf32, #tpu.memory_space<vmem>>, vector<128x128xf32>
      tpu.vector_store %arg9[%c0, %c0_5], %13 {strides = array<i32>} : memref<128x128xf32, #tpu.memory_space<vmem>>, vector<128x128xf32>,
    } else {
    }
    %c1_i32 = arith.constant 1 : i32
    %3 = arith.muli %arg0, %c1_i32 : i32
    %4 = arith.addi %3, %arg1 : i32
    %5 = arith.index_cast %4 : i32 to index
    %6 = memref.load %arg2[%5] : memref<1xi32, #tpu.memory_space<smem>>
    %c0_i32_1 = arith.constant 0 : i32
    %7 = arith.cmpi sgt, %6, %c0_i32_1 : i32
    %8 = arith.extui %7 : i1 to i32
    %c0_i32_2 = arith.constant 0 : i32
    %9 = arith.cmpi ne, %8, %c0_i32_2 : i32
    scf.if %9 {
      %c0 = arith.constant 0 : index
      %c0_5 = arith.constant 0 : index
      %13 = vector.load %arg3[%c0, %c0_5] : memref<128x128xi8, #tpu.memory_space<vmem>>, vector<128x128xi8>
      %14 = arith.sitofp %13 : vector<128x128xi8> to vector<128x128xbf16>
      %c128_i32 = arith.constant 128 : i32
      %15 = arith.muli %arg1, %c128_i32 : i32
      %16 = tpu.assume_multiple %15, 128 : i32
      %17 = arith.index_cast %16 : i32 to index
      %c0_6 = arith.constant 0 : index
      %18 = vector.load %arg4[%17, %c0_6] : memref<128x128xbf16, #tpu.memory_space<vmem>>, vector<128x128xbf16>
      %c0_7 = arith.constant 0 : index
      %c0_8 = arith.constant 0 : index
      %19 = vector.load %arg9[%c0_7, %c0_8] : memref<128x128xf32, #tpu.memory_space<vmem>>, vector<128x128xf32>
      %cst = arith.constant dense<0.000000e+00> : vector<128x128xf32>
      %20 = tpu.matmul %14, %18, %cst {dimension_numbers = #tpu.dot_dimension_numbers<[1], [0], [0], [1], [0, 0, 1, 1], [], []>} : vector<128x128xbf16>, vector<128x128xbf16>, vector<128x128xf32> -> vector<128x128xf32>
      %21 = arith.addf %19, %20 : vector<128x128xf32>
      %c0_9 = arith.constant 0 : index
      %c0_10 = arith.constant 0 : index
      %22 = vector.load %arg9[%c0_9, %c0_10] : memref<128x128xf32, #tpu.memory_space<vmem>>, vector<128x128xf32>
      tpu.vector_store %arg9[%c0_9, %c0_10], %21 {strides = array<i32>} : memref<128x128xf32, #tpu.memory_space<vmem>>, vector<128x128xf32>,
    } else {
    }
    %c0_i32_3 = arith.constant 0 : i32
    %10 = arith.cmpi eq, %arg1, %c0_i32_3 : i32
    %11 = arith.extui %10 : i1 to i32
    %c0_i32_4 = arith.constant 0 : i32
    %12 = arith.cmpi ne, %11, %c0_i32_4 : i32
    scf.if %12 {
      %c0 = arith.constant 0 : index
      %c0_5 = arith.constant 0 : index
      %13 = vector.load %arg9[%c0, %c0_5] : memref<128x128xf32, #tpu.memory_space<vmem>>, vector<128x128xf32>
      %c0_6 = arith.constant 0 : index
      %c0_7 = arith.constant 0 : index
      %14 = vector.load %arg5[%c0_6, %c0_7] : memref<128x1xf32, #tpu.memory_space<vmem>>, vector<128x1xf32>
      %15 = vector.broadcast %14 : vector<128x1xf32> to vector<128x128xf32>
      %16 = arith.mulf %13, %15 : vector<128x128xf32>
      %17 = arith.truncf %16 : vector<128x128xf32> to vector<128x128xbf16>
      %c0_8 = arith.constant 0 : index
      %c0_9 = arith.constant 0 : index
      %18 = vector.load %arg6[%c0_8, %c0_9] : memref<128x128xbf16, #tpu.memory_space<vmem>>, vector<128x128xbf16>
      %cst = arith.constant dense<0.000000e+00> : vector<128x128xf32>
      %19 = tpu.matmul %17, %18, %cst {dimension_numbers = #tpu.dot_dimension_numbers<[1], [0], [0], [1], [0, 0, 1, 1], [], []>} : vector<128x128xbf16>, vector<128x128xbf16>, vector<128x128xf32> -> vector<128x128xf32>
      %c0_10 = arith.constant 0 : index
      %c0_11 = arith.constant 0 : index
      %20 = vector.load %arg7[%c0_10, %c0_11] : memref<1x128xf32, #tpu.memory_space<vmem>>, vector<1x128xf32>
      %21 = vector.broadcast %20 : vector<1x128xf32> to vector<128x128xf32>
      %22 = arith.addf %19, %21 : vector<128x128xf32>
      %cst_12 = arith.constant 0.000000e+00 : f32
      %23 = vector.broadcast %cst_12 : f32 to vector<128x128xf32>
      %24 = arith.maximumf %22, %23 : vector<128x128xf32>
      %25 = arith.truncf %24 : vector<128x128xf32> to vector<128x128xbf16>
      %c0_13 = arith.constant 0 : index
      %c0_14 = arith.constant 0 : index
      %26 = vector.load %arg8[%c0_13, %c0_14] : memref<128x128xbf16, #tpu.memory_space<vmem>>, vector<128x128xbf16>
      tpu.vector_store %arg8[%c0_13, %c0_14], %25 {strides = array<i32>} : memref<128x128xbf16, #tpu.memory_space<vmem>>, vector<128x128xbf16>,
    } else {
    }
    return
  }
  func.func @transform_0(%arg0: i32, %arg1: i32, %arg2: memref<1xi32, #tpu.memory_space<smem>>) -> (i32, i32) {
    %c0_i32 = arith.constant 0 : i32
    return %arg0, %arg1 : i32, i32
  }
  func.func @transform_1(%arg0: i32, %arg1: i32, %arg2: memref<1xi32, #tpu.memory_space<smem>>) -> (i32, i32) {
    %c0_i32 = arith.constant 0 : i32
    %c0_i32_0 = arith.constant 0 : i32
    %c0_i32_1 = arith.constant 0 : i32
    return %c0_i32, %c0_i32_0 : i32, i32
  }
  func.func @transform_2(%arg0: i32, %arg1: i32, %arg2: memref<1xi32, #tpu.memory_space<smem>>) -> (i32, i32) {
    %c0_i32 = arith.constant 0 : i32
    %c0_i32_0 = arith.constant 0 : i32
    return %arg0, %c0_i32 : i32, i32
  }
  func.func @transform_3(%arg0: i32, %arg1: i32, %arg2: memref<1xi32, #tpu.memory_space<smem>>) -> (i32, i32) {
    %c0_i32 = arith.constant 0 : i32
    %c0_i32_0 = arith.constant 0 : i32
    %c0_i32_1 = arith.constant 0 : i32
    return %c0_i32, %c0_i32_0 : i32, i32
  }
  func.func @transform_4(%arg0: i32, %arg1: i32, %arg2: memref<1xi32, #tpu.memory_space<smem>>) -> (i32, i32) {
    %c0_i32 = arith.constant 0 : i32
    %c0_i32_0 = arith.constant 0 : i32
    %c0_i32_1 = arith.constant 0 : i32
    return %c0_i32, %c0_i32_0 : i32, i32
  }
  func.func @transform_5(%arg0: i32, %arg1: i32, %arg2: memref<1xi32, #tpu.memory_space<smem>>) -> (i32, i32) {
    %c0_i32 = arith.constant 0 : i32
    %c0_i32_0 = arith.constant 0 : i32
    return %arg0, %c0_i32 : i32, i32
  }
}

</mosaic_0001>

<bundles_post_ra>
// kernel: tpu_custom_call.1
= control target key start
LH: loop header
LB: loop body
LE: loop exit
PB: predicated region body
PF: predicated region fallthrough
CT: control target
= control target key end

     0   :  { %12 = vsyncpa [#allocation6], 0  ;;  %s991_s0 = inlined_call_operand.<no memory space> [shape: s32[1], index: 0, kind: input, shape index: {}]   ;;  %s992_s1 = inlined_call_operand.hbm [shape: s8[128,128], index: 1, kind: input, shape index: {}]   ;;  %s993_s2 = inlined_call_operand.vmem [shape: bf16[128,128], index: 2, kind: input, shape index: {}]   ;;  %s994_s3 = inlined_call_operand.vmem [shape: f32[128,1], index: 3, kind: input, shape index: {}]   ;;  %s995_s4 = inlined_call_operand.vmem [shape: bf16[128,128], index: 4, kind: input, shape index: {}]   ;;  %s996_s5 = inlined_call_operand.vmem [shape: f32[1,128], index: 5, kind: input, shape index: {}]   ;;  %s997_s6 = inlined_call_operand.hbm [shape: bf16[128,128], index: 6, kind: output, shape index: {}]  }
   0x1   :  { %13 = vsyncpa [#allocation7], 0  ;;  %s18_s23 = sshll.u32 %s992_s1, 4  ;;  %s840_s24 = smov [#allocation5]   ;;  %s19_s23 = int_to_ptr.hbm [resolvable:$true] %s18_s23 }
   0x2   :  { %s20_s25 = sshll.u32 %s840_s24, 4  ;;  %s841_s26 = smov 128   ;;  %s21_s25 = int_to_ptr.vmem [resolvable:$true] %s20_s25 }
   0x3   :  { %s842_s27 = smov 8  }
   0x4   :  { %26 = dma.hbm_to_vmem [thread:$0]  %s19_s23, 512, %s21_s25, [#allocation6], %s841_s26, %s841_s26, %s842_s27  }
   0x5   :  { %836 = dma.done.wait [#allocation6], 512  }
   0x6   :  { %837 = vsyncadd [#allocation6], 4294966784  ;;  %v843_v0 = vmov 0.0   ;;  %p600_p0 = scmp.le.s32.totalorder %s991_s0, 0 }
   0x7   :  { %43 = vst [vmem:[#allocation2 + $0x30] sm:$0xff] %v843_v0 }
   0x8   :  { %44 = vst [vmem:[#allocation2] sm:$0xff] %v843_v0 }
   0x9   :  { %45 = vst [vmem:[#allocation2 + $0x58] sm:$0xff] %v843_v0 }
   0xa   :  { %46 = vst [vmem:[#allocation2 + $0x18] sm:$0xff] %v843_v0 }
   0xb   :  { %47 = vst [vmem:[#allocation2 + $0x50] sm:$0xff] %v843_v0 }
   0xc   :  { %48 = vst [vmem:[#allocation2 + $0x68] sm:$0xff] %v843_v0 }
   0xd   :  { %49 = vst [vmem:[#allocation2 + $0x8] sm:$0xff] %v843_v0 }
   0xe   :  { %50 = vst [vmem:[#allocation2 + $0x48] sm:$0xff] %v843_v0 }
   0xf   :  { %51 = vst [vmem:[#allocation2 + $0x40] sm:$0xff] %v843_v0 }
  0x10   :  { %52 = vst [vmem:[#allocation2 + $0x20] sm:$0xff] %v843_v0 }
  0x11   :  { %53 = vst [vmem:[#allocation2 + $0x10] sm:$0xff] %v843_v0 }
  0x12   :  { %54 = vst [vmem:[#allocation2 + $0x38] sm:$0xff] %v843_v0  ;;  %64 = sbr.rel (%p600_p0) target bundleno = 216 (0xd8), region = 33 }
  0x13   :  { %55 = vst [vmem:[#allocation2 + $0x60] sm:$0xff] %v843_v0 }
  0x14   :  { %56 = vst [vmem:[#allocation2 + $0x70] sm:$0xff] %v843_v0 }
  0x15   :  { %57 = vst [vmem:[#allocation2 + $0x78] sm:$0xff] %v843_v0 }
  0x16   :  { %58 = vst [vmem:[#allocation2 + $0x28] sm:$0xff] %v843_v0 }
  0x17   :  { %v672_v1 = vld [vmem:[%s993_s2 + $0x38] sm:$0xff]  ;;  %v671_v2 = vld [vmem:[%s993_s2 + $0x30] sm:$0xff]  ;;  %v670_v3 = vld [vmem:[%s993_s2 + $0x28] sm:$0xff] }
  0x18   :  { %194 = vmatpush.bf16.msra.mxu0 %v672_v1  ;;  %728 = vmatpush.bf16.msra.mxu1 %v672_v1  ;;  %v669_v4 = vld [vmem:[%s993_s2 + $0x20] sm:$0xff]  ;;  %v668_v5 = vld [vmem:[%s993_s2 + $0x18] sm:$0xff]  ;;  %v667_v6 = vld [vmem:[%s993_s2 + $0x10] sm:$0xff] }
  0x19   :  { %729 = vmatpush.bf16.msra.mxu2 %v672_v1  ;;  %730 = vmatpush.bf16.msra.mxu3 %v672_v1  ;;  %v65_v7 = vld [vmem:[#allocation5] sm:$0xff]  ;;  %v66_v8 = vld [vmem:[#allocation5 + $0x8] sm:$0xff]  ;;  %v67_v9 = vld [vmem:[#allocation5 + $0x10] sm:$0xff] }
  0x1a   :  { %v68_v10 = vld [vmem:[#allocation5 + $0x18] sm:$0xff]  ;;  %v69_v11 = vunpack.c.0.s8 %v65_v7  ;;  %v70_v12 = vunpack.c.1.s8 %v65_v7  ;;  %v73_v13 = vunpack.c.0.s8 %v66_v8  ;;  %v74_v14 = vunpack.c.1.s8 %v66_v8  ;;  %v666_v15 = vld [vmem:[%s993_s2 + $0x8] sm:$0xff]  ;;  %v665_v24 = vld [vmem:[%s993_s2] sm:$0xff] }
  0x1b   :  { %v77_v16 = vunpack.c.0.s8 %v67_v9  ;;  %v78_v17 = vunpack.c.1.s8 %v67_v9  ;;  %v81_v18 = vunpack.c.0.s8 %v68_v10  ;;  %v82_v19 = vunpack.c.1.s8 %v68_v10  ;;  %v130_v53 = vld [vmem:[#allocation2 + $0x30] sm:$0xff]  ;;  %v138_v59 = vld [vmem:[#allocation2 + $0x40] sm:$0xff]  ;;  %v135_v62 = vld [vmem:[#allocation2 + $0x68] sm:$0xff] }
  0x1c   :  { %195 = vmatpush.bf16.msra.mxu0 %v671_v2  ;;  %731 = vmatpush.bf16.msra.mxu1 %v671_v2  ;;  %v85_v20 = vcvt.s32.f32 %v69_v11  ;;  %v86_v21 = vcvt.s32.f32 %v70_v12  ;;  %v89_v22 = vcvt.s32.f32 %v73_v13  ;;  %v90_v23 = vcvt.s32.f32 %v74_v14  ;;  %v134_v54 = vld [vmem:[#allocation2 + $0x50] sm:$0xff]  ;;  %v142_v60 = vld [vmem:[#allocation2 + $0x60] sm:$0xff] }
  0x1d   :  { %732 = vmatpush.bf16.msra.mxu2 %v671_v2  ;;  %733 = vmatpush.bf16.msra.mxu3 %v671_v2  ;;  %v93_v25 = vcvt.s32.f32 %v77_v16  ;;  %v94_v26 = vcvt.s32.f32 %v78_v17  ;;  %v97_v27 = vcvt.s32.f32 %v81_v18  ;;  %v98_v28 = vcvt.s32.f32 %v82_v19  ;;  %v131_v61 = vld [vmem:[#allocation2] sm:$0xff]  ;;  %v140_v19 = vld [vmem:[#allocation2 + $0x10] sm:$0xff] }
  0x1e   :  { %v101_v29 = vpack.c.bf16 %v86_v21, %v85_v20  ;;  %v103_v30 = vpack.c.bf16 %v90_v23, %v89_v22  ;;  %v71_v33 = vunpack.c.2.s8 %v65_v7  ;;  %v72_v34 = vunpack.c.3.s8 %v65_v7  ;;  %v139_v7 = vld [vmem:[#allocation2 + $0x20] sm:$0xff]  ;;  %v144_v20 = vld [vmem:[#allocation2 + $0x78] sm:$0xff]  ;;  %v137_v22 = vld [vmem:[#allocation2 + $0x48] sm:$0xff] }
  0x1f   :  { %v105_v31 = vpack.c.bf16 %v94_v26, %v93_v25  ;;  %v107_v32 = vpack.c.bf16 %v98_v28, %v97_v27  ;;  %v75_v35 = vunpack.c.2.s8 %v66_v8  ;;  %v76_v36 = vunpack.c.3.s8 %v66_v8  ;;  %v143_v8 = vld [vmem:[#allocation2 + $0x70] sm:$0xff]  ;;  %v133_v21 = vld [vmem:[#allocation2 + $0x18] sm:$0xff] }
  0x20   :  { %196 = vmatpush.bf16.msra.mxu0 %v670_v3  ;;  %734 = vmatpush.bf16.msra.mxu1 %v670_v3  ;;  %v79_v37 = vunpack.c.2.s8 %v67_v9  ;;  %v80_v38 = vunpack.c.3.s8 %v67_v9  ;;  %v83_v39 = vunpack.c.2.s8 %v68_v10  ;;  %v84_v40 = vunpack.c.3.s8 %v68_v10  ;;  %v132_v9 = vld [vmem:[#allocation2 + $0x58] sm:$0xff]  ;;  %v136_v10 = vld [vmem:[#allocation2 + $0x8] sm:$0xff] }
  0x21   :  { %735 = vmatpush.bf16.msra.mxu2 %v670_v3  ;;  %736 = vmatpush.bf16.msra.mxu3 %v670_v3  ;;  %v87_v41 = vcvt.s32.f32 %v71_v33  ;;  %v88_v42 = vcvt.s32.f32 %v72_v34  ;;  %v91_v43 = vcvt.s32.f32 %v75_v35  ;;  %v92_v44 = vcvt.s32.f32 %v76_v36 }
  0x22   :  { %v95_v45 = vcvt.s32.f32 %v79_v37  ;;  %v96_v46 = vcvt.s32.f32 %v80_v38  ;;  %v99_v47 = vcvt.s32.f32 %v83_v39  ;;  %v100_v48 = vcvt.s32.f32 %v84_v40 }
  0x23   :  { %v102_v49 = vpack.c.bf16 %v88_v42, %v87_v41  ;;  %v104_v50 = vpack.c.bf16 %v92_v44, %v91_v43 }
  0x24   :  { %197 = vmatpush.bf16.msra.mxu0 %v669_v4  ;;  %737 = vmatpush.bf16.msra.mxu1 %v669_v4  ;;  %v106_v51 = vpack.c.bf16 %v96_v46, %v95_v45  ;;  %v108_v52 = vpack.c.bf16 %v100_v48, %v99_v47 }
  0x25   :  { %738 = vmatpush.bf16.msra.mxu2 %v669_v4  ;;  %739 = vmatpush.bf16.msra.mxu3 %v669_v4 }
  0x28   :  { %198 = vmatpush.bf16.msra.mxu0 %v668_v5  ;;  %740 = vmatpush.bf16.msra.mxu1 %v668_v5 }
  0x29   :  { %741 = vmatpush.bf16.msra.mxu2 %v668_v5  ;;  %742 = vmatpush.bf16.msra.mxu3 %v668_v5 }
  0x2c   :  { %199 = vmatpush.bf16.msra.mxu0 %v667_v6  ;;  %743 = vmatpush.bf16.msra.mxu1 %v667_v6 }
  0x2d   :  { %744 = vmatpush.bf16.msra.mxu2 %v667_v6  ;;  %745 = vmatpush.bf16.msra.mxu3 %v667_v6 }
  0x30   :  { %200 = vmatpush.bf16.msra.mxu0 %v666_v15  ;;  %746 = vmatpush.bf16.msra.mxu1 %v666_v15 }
  0x31   :  { %747 = vmatpush.bf16.msra.mxu2 %v666_v15  ;;  %748 = vmatpush.bf16.msra.mxu3 %v666_v15 }
  0x34   :  { %201 = vmatpush.bf16.msra.mxu0 %v665_v24  ;;  %749 = vmatpush.bf16.msra.mxu1 %v665_v24 }
  0x35   :  { %750 = vmatpush.bf16.msra.mxu2 %v665_v24  ;;  %751 = vmatpush.bf16.msra.mxu3 %v665_v24 }
  0x37   :  { %202 = vmatmul.bf16.vlgmr.msra.gmra.mxu0 %v101_v29  ;;  %212 = vmatmul.bf16.vlgmr.msra.gmra.mxu1 %v103_v30 }
  0x38   :  { %222 = vmatmul.bf16.vlgmr.msra.gmra.mxu2 %v105_v31  ;;  %232 = vmatmul.bf16.vlgmr.msra.gmra.mxu3 %v107_v32  ;;  %v141_v31 = vld [vmem:[#allocation2 + $0x38] sm:$0xff]  ;;  %v145_v32 = vld [vmem:[#allocation2 + $0x28] sm:$0xff] }
  0x47   :  { %207 = vmatmul.bf16.gmra.mxu0 %v102_v49  ;;  %217 = vmatmul.bf16.gmra.mxu1 %v104_v50 }
  0x48   :  { %227 = vmatmul.bf16.gmra.mxu2 %v106_v51  ;;  %237 = vmatmul.bf16.gmra.mxu3 %v108_v52 }
  0xb4   :  { %v203_v55 = vpop.f32.mrf.mxu0  ;;  %v213_v56 = vpop.f32.mrf.mxu1 }
  0xb5   :  { %v243_v57 = vadd.f32 %v203_v55, %v130_v53  ;;  %v247_v58 = vadd.f32 %v213_v56, %v134_v54 }
  0xb7   :  { %259 = vst [vmem:[#allocation2 + $0x30] sm:$0xff] %v243_v57 }
  0xb8   :  { %263 = vst [vmem:[#allocation2 + $0x50] sm:$0xff] %v247_v58 }
  0xbb   :  { %v223_v63 = vpop.f32.mrf.mxu2  ;;  %v233_v0 = vpop.f32.mrf.mxu3 }
  0xbc   :  { %v251_v1 = vadd.f32 %v223_v63, %v138_v59  ;;  %v255_v2 = vadd.f32 %v233_v0, %v142_v60  ;;  %v205_v3 = vpop.f32.mrf.mxu0  ;;  %v215_v4 = vpop.f32.mrf.mxu1 }
  0xbd   :  { %v244_v5 = vadd.f32 %v205_v3, %v131_v61  ;;  %v248_v6 = vadd.f32 %v215_v4, %v135_v62 }
  0xbe   :  { %267 = vst [vmem:[#allocation2 + $0x40] sm:$0xff] %v251_v1 }
  0xbf   :  { %271 = vst [vmem:[#allocation2 + $0x60] sm:$0xff] %v255_v2 }
  0xc0   :  { %260 = vst [vmem:[#allocation2] sm:$0xff] %v244_v5 }
  0xc1   :  { %264 = vst [vmem:[#allocation2 + $0x68] sm:$0xff] %v248_v6 }
  0xc3   :  { %v225_v11 = vpop.f32.mrf.mxu2  ;;  %v235_v12 = vpop.f32.mrf.mxu3 }
  0xc4   :  { %v252_v13 = vadd.f32 %v225_v11, %v139_v7  ;;  %v256_v14 = vadd.f32 %v235_v12, %v143_v8  ;;  %v208_v15 = vpop.f32.mrf.mxu0  ;;  %v218_v16 = vpop.f32.mrf.mxu1 }
  0xc5   :  { %v245_v17 = vadd.f32 %v208_v15, %v132_v9  ;;  %v249_v18 = vadd.f32 %v218_v16, %v136_v10 }
  0xc6   :  { %268 = vst [vmem:[#allocation2 + $0x20] sm:$0xff] %v252_v13 }
  0xc7   :  { %272 = vst [vmem:[#allocation2 + $0x70] sm:$0xff] %v256_v14 }
  0xc8   :  { %261 = vst [vmem:[#allocation2 + $0x58] sm:$0xff] %v245_v17 }
  0xc9   :  { %265 = vst [vmem:[#allocation2 + $0x8] sm:$0xff] %v249_v18 }
  0xcb   :  { %v228_v23 = vpop.f32.mrf.mxu2  ;;  %v238_v24 = vpop.f32.mrf.mxu3 }
  0xcc   :  { %v253_v25 = vadd.f32 %v228_v23, %v140_v19  ;;  %v257_v26 = vadd.f32 %v238_v24, %v144_v20  ;;  %v210_v27 = vpop.f32.mrf.mxu0  ;;  %v220_v28 = vpop.f32.mrf.mxu1 }
  0xcd   :  { %v246_v29 = vadd.f32 %v210_v27, %v133_v21  ;;  %v250_v30 = vadd.f32 %v220_v28, %v137_v22 }
  0xce   :  { %269 = vst [vmem:[#allocation2 + $0x10] sm:$0xff] %v253_v25 }
  0xcf   :  { %273 = vst [vmem:[#allocation2 + $0x78] sm:$0xff] %v257_v26 }
  0xd0   :  { %262 = vst [vmem:[#allocation2 + $0x18] sm:$0xff] %v246_v29 }
  0xd1   :  { %266 = vst [vmem:[#allocation2 + $0x48] sm:$0xff] %v250_v30 }
  0xd3   :  { %v230_v33 = vpop.f32.mrf.mxu2  ;;  %v240_v34 = vpop.f32.mrf.mxu3 }
  0xd4   :  { %v254_v35 = vadd.f32 %v230_v33, %v141_v31  ;;  %v258_v36 = vadd.f32 %v240_v34, %v145_v32 }
  0xd6   :  { %270 = vst [vmem:[#allocation2 + $0x38] sm:$0xff] %v254_v35 }
  0xd7   :  { %274 = vst [vmem:[#allocation2 + $0x28] sm:$0xff] %v258_v36 }
  0xd8 PF:  { %v306_v37 = vld [vmem:[%s994_s3 + $0x60] sm:$0xff]  ;;  %v844_v40 = vmov 0   ;;  %v307_v41 = vld [vmem:[%s994_s3 + $0x68] sm:$0xff]  ;;  %v680_v44 = vld [vmem:[%s995_s4 + $0x38] sm:$0xff]  ;;  %s585_s17 = sshll.u32 %s997_s6, 4  ;;  %s846_s18 = smov 64   ;;  %s586_s17 = int_to_ptr.hbm [resolvable:$true] %s585_s17 }
  0xd9   :  { %v302_v38 = vld [vmem:[%s994_s3 + $0x40] sm:$0xff]  ;;  %786 = vset.pattern.permute.xlu2 %v844_v40  ;;  %785 = vset.pattern.permute.xlu1 %v844_v40  ;;  %v303_v42 = vld [vmem:[%s994_s3 + $0x48] sm:$0xff]  ;;  %v304_v47 = vld [vmem:[%s994_s3 + $0x50] sm:$0xff]  ;;  %s847_s19 = smov 4  }
  0xda   :  { %v294_v39 = vld [vmem:[%s994_s3] sm:$0xff]  ;;  %784 = vset.pattern.permute.xlu0 %v844_v40  ;;  %372 = vperm.xlu1 %785, %v306_v37   ;;  %v295_v43 = vld [vmem:[%s994_s3 + $0x8] sm:$0xff]  ;;  %v308_v48 = vld [vmem:[%s994_s3 + $0x70] sm:$0xff] }
  0xdb   :  { %352 = vperm.xlu0 %784, %v302_v38   ;;  %312 = vperm.xlu2 %786, %v294_v39   ;;  %v299_v45 = vld [vmem:[%s994_s3 + $0x28] sm:$0xff]  ;;  %v298_v46 = vld [vmem:[%s994_s3 + $0x20] sm:$0xff]  ;;  %v305_v49 = vld [vmem:[%s994_s3 + $0x58] sm:$0xff] }
  0xdc   :  { %482 = vmatpush.bf16.msra.mxu0 %v680_v44  ;;  %753 = vmatpush.bf16.msra.mxu2 %v680_v44  ;;  %v309_v50 = vld [vmem:[%s994_s3 + $0x78] sm:$0xff]  ;;  %v296_v52 = vld [vmem:[%s994_s3 + $0x10] sm:$0xff]  ;;  %v678_v56 = vld [vmem:[%s995_s4 + $0x28] sm:$0xff] }
  0xdd   :  { %754 = vmatpush.bf16.msra.mxu3 %v680_v44  ;;  %752 = vmatpush.bf16.msra.mxu1 %v680_v44  ;;  %v297_v51 = vld [vmem:[%s994_s3 + $0x18] sm:$0xff]  ;;  %v300_v53 = vld [vmem:[%s994_s3 + $0x30] sm:$0xff]  ;;  %v677_v57 = vld [vmem:[%s995_s4 + $0x20] sm:$0xff] }
  0xde   :  { %v301_v54 = vld [vmem:[%s994_s3 + $0x38] sm:$0xff]  ;;  %v679_v55 = vld [vmem:[%s995_s4 + $0x30] sm:$0xff]  ;;  %v674_v60 = vld [vmem:[%s995_s4 + $0x8] sm:$0xff] }
  0xdf   :  { %v676_v58 = vld [vmem:[%s995_s4 + $0x18] sm:$0xff]  ;;  %v675_v59 = vld [vmem:[%s995_s4 + $0x10] sm:$0xff]  ;;  %v673_v61 = vld [vmem:[%s995_s4] sm:$0xff] }
  0xe0   :  { %483 = vmatpush.bf16.msra.mxu0 %v679_v55  ;;  %756 = vmatpush.bf16.msra.mxu2 %v679_v55  ;;  %v278_v63 = vld [vmem:[#allocation2 + $0x30] sm:$0xff]  ;;  %v279_v0 = vld [vmem:[#allocation2] sm:$0xff]  ;;  %v283_v20 = vld [vmem:[#allocation2 + $0x68] sm:$0xff] }
  0xe1   :  { %757 = vmatpush.bf16.msra.mxu3 %v679_v55  ;;  %755 = vmatpush.bf16.msra.mxu1 %v679_v55  ;;  %v290_v7 = vld [vmem:[#allocation2 + $0x60] sm:$0xff]  ;;  %v291_v8 = vld [vmem:[#allocation2 + $0x70] sm:$0xff]  ;;  %v293_v27 = vld [vmem:[#allocation2 + $0x28] sm:$0xff] }
  0xe2   :  { %377 = vperm.xlu1 %785, %v307_v41   ;;  %v286_v10 = vld [vmem:[#allocation2 + $0x40] sm:$0xff]  ;;  %v282_v21 = vld [vmem:[#allocation2 + $0x50] sm:$0xff]  ;;  %v292_v28 = vld [vmem:[#allocation2 + $0x78] sm:$0xff] }
  0xe3   :  { %357 = vperm.xlu0 %784, %v303_v42   ;;  %317 = vperm.xlu2 %786, %v295_v43   ;;  %v287_v11 = vld [vmem:[#allocation2 + $0x20] sm:$0xff]  ;;  %v288_v29 = vld [vmem:[#allocation2 + $0x10] sm:$0xff]  ;;  %v289_v30 = vld [vmem:[#allocation2 + $0x38] sm:$0xff] }
  0xe4   :  { %484 = vmatpush.bf16.msra.mxu0 %v678_v56  ;;  %759 = vmatpush.bf16.msra.mxu2 %v678_v56  ;;  %v281_v40 = vld [vmem:[#allocation2 + $0x18] sm:$0xff]  ;;  %v787_v55 = vld [vmem:[%s996_s5] ss:$0 sm:$0xff]  ;;  %s845_s5 = smov [#allocation8]  }
  0xe5   :  { %760 = vmatpush.bf16.msra.mxu3 %v678_v56  ;;  %758 = vmatpush.bf16.msra.mxu1 %v678_v56  ;;  %v280_v41 = vld [vmem:[#allocation2 + $0x58] sm:$0xff]  ;;  %s583_s14 = sshll.u32 %s845_s5, 4  ;;  %s584_s14 = int_to_ptr.vmem [resolvable:$true] %s583_s14 }
  0xe8   :  { %485 = vmatpush.bf16.msra.mxu0 %v677_v57  ;;  %762 = vmatpush.bf16.msra.mxu2 %v677_v57 }
  0xe9   :  { %763 = vmatpush.bf16.msra.mxu3 %v677_v57  ;;  %761 = vmatpush.bf16.msra.mxu1 %v677_v57 }
  0xea   :  { %337 = vperm.xlu1 %785, %v299_v45  }
  0xeb   :  { %332 = vperm.xlu0 %784, %v298_v46   ;;  %362 = vperm.xlu2 %786, %v304_v47  }
  0xec   :  { %486 = vmatpush.bf16.msra.mxu0 %v676_v58  ;;  %765 = vmatpush.bf16.msra.mxu2 %v676_v58 }
  0xed   :  { %766 = vmatpush.bf16.msra.mxu3 %v676_v58  ;;  %764 = vmatpush.bf16.msra.mxu1 %v676_v58 }
  0xf0   :  { %487 = vmatpush.bf16.msra.mxu0 %v675_v59  ;;  %768 = vmatpush.bf16.msra.mxu2 %v675_v59 }
  0xf1   :  { %769 = vmatpush.bf16.msra.mxu3 %v675_v59  ;;  %767 = vmatpush.bf16.msra.mxu1 %v675_v59 }
  0xf2   :  { %382 = vperm.xlu1 %785, %v308_v48   ;;  %v284_v48 = vld [vmem:[#allocation2 + $0x8] sm:$0xff] }
  0xf3   :  { %367 = vperm.xlu0 %784, %v305_v49   ;;  %387 = vperm.xlu2 %786, %v309_v50   ;;  %v285_v49 = vld [vmem:[#allocation2 + $0x48] sm:$0xff] }
  0xf4   :  { %488 = vmatpush.bf16.msra.mxu0 %v674_v60  ;;  %771 = vmatpush.bf16.msra.mxu2 %v674_v60 }
  0xf5   :  { %772 = vmatpush.bf16.msra.mxu3 %v674_v60  ;;  %770 = vmatpush.bf16.msra.mxu1 %v674_v60 }
  0xf8   :  { %489 = vmatpush.bf16.msra.mxu0 %v673_v61  ;;  %774 = vmatpush.bf16.msra.mxu2 %v673_v61 }
  0xf9   :  { %775 = vmatpush.bf16.msra.mxu3 %v673_v61  ;;  %773 = vmatpush.bf16.msra.mxu1 %v673_v61 }
  0xfa   :  { %327 = vperm.xlu1 %785, %v297_v51  }
  0xfb   :  { %322 = vperm.xlu0 %784, %v296_v52   ;;  %342 = vperm.xlu2 %786, %v300_v53  }
 0x103   :  { %347 = vperm.xlu0 %784, %v301_v54  }
 0x135   :  { %v313_v62 = vpop.permute.xlu2 %312 }
 0x136   :  { %v390_v1 = vmul.f32 %v313_v62, %v278_v63 }
 0x13d   :  { %v318_v2 = vpop.permute.xlu2 %317 }
 0x13e   :  { %v391_v3 = vmul.f32 %v318_v2, %v279_v0 }
 0x140   :  { %v406_v4 = vpack.c.bf16 %v391_v3, %v390_v1 }
 0x142   :  { %490 = vmatmul.bf16.vlgmr.msra.gmra.mxu0 %v406_v4 }
 0x145   :  { %v363_v19 = vpop.permute.xlu2 %362 }
 0x146   :  { %v400_v36 = vmul.f32 %v363_v19, %v288_v29 }
 0x14c   :  { %v373_v5 = vpop.permute.xlu1 %372 }
 0x14d   :  { %v353_v6 = vpop.permute.xlu0 %352  ;;  %v402_v9 = vmul.f32 %v373_v5, %v290_v7  ;;  %v388_v31 = vpop.permute.xlu2 %387 }
 0x14e   :  { %v398_v15 = vmul.f32 %v353_v6, %v286_v10  ;;  %v405_v33 = vmul.f32 %v388_v31, %v293_v27 }
 0x154   :  { %v378_v12 = vpop.permute.xlu1 %377 }
 0x155   :  { %v403_v13 = vmul.f32 %v378_v12, %v291_v8  ;;  %v358_v14 = vpop.permute.xlu0 %357  ;;  %v343_v47 = vpop.permute.xlu2 %342 }
 0x156   :  { %v399_v16 = vmul.f32 %v358_v14, %v287_v11  ;;  %v396_v51 = vmul.f32 %v343_v47, %v284_v48 }
 0x157   :  { %v412_v17 = vpack.c.bf16 %v403_v13, %v402_v9 }
 0x158   :  { %v410_v18 = vpack.c.bf16 %v399_v16, %v398_v15 }
 0x159   :  { %520 = vmatmul.bf16.vlgmr.msra.gmra.mxu3 %v412_v17 }
 0x15a   :  { %510 = vmatmul.bf16.vlgmr.msra.gmra.mxu2 %v410_v18 }
 0x15c   :  { %v338_v22 = vpop.permute.xlu1 %337 }
 0x15d   :  { %v395_v23 = vmul.f32 %v338_v22, %v283_v20  ;;  %v333_v24 = vpop.permute.xlu0 %332 }
 0x15e   :  { %v394_v25 = vmul.f32 %v333_v24, %v282_v21 }
 0x160   :  { %v408_v26 = vpack.c.bf16 %v395_v23, %v394_v25 }
 0x162   :  { %500 = vmatmul.bf16.vlgmr.msra.gmra.mxu1 %v408_v26 }
 0x164   :  { %v383_v32 = vpop.permute.xlu1 %382 }
 0x165   :  { %v404_v34 = vmul.f32 %v383_v32, %v292_v28  ;;  %v368_v35 = vpop.permute.xlu0 %367 }
 0x166   :  { %v401_v37 = vmul.f32 %v368_v35, %v289_v30 }
 0x167   :  { %v413_v38 = vpack.c.bf16 %v405_v33, %v404_v34 }
 0x168   :  { %v411_v39 = vpack.c.bf16 %v401_v37, %v400_v36 }
 0x169   :  { %525 = vmatmul.bf16.gmra.mxu3 %v413_v38 }
 0x16a   :  { %515 = vmatmul.bf16.gmra.mxu2 %v411_v39 }
 0x16c   :  { %v328_v42 = vpop.permute.xlu1 %327 }
 0x16d   :  { %v393_v43 = vmul.f32 %v328_v42, %v281_v40  ;;  %v323_v44 = vpop.permute.xlu0 %322 }
 0x16e   :  { %v392_v45 = vmul.f32 %v323_v44, %v280_v41 }
 0x170   :  { %v407_v46 = vpack.c.bf16 %v393_v43, %v392_v45 }
 0x172   :  { %495 = vmatmul.bf16.gmra.mxu0 %v407_v46 }
 0x175   :  { %v348_v50 = vpop.permute.xlu0 %347 }
 0x176   :  { %v397_v52 = vmul.f32 %v348_v50, %v285_v49 }
 0x178   :  { %v409_v53 = vpack.c.bf16 %v397_v52, %v396_v51 }
 0x17a   :  { %505 = vmatmul.bf16.gmra.mxu1 %v409_v53 }
 0x1bf   :  { %v491_v54 = vpop.f32.mrf.mxu0 }
 0x1c0   :  { %v492_v56 = vadd.f32 %v787_v55, %v491_v54 }
 0x1c2   :  { %v531_v58 = vmax.f32 %v492_v56, 0.0 }
 0x1c7   :  { %v493_v57 = vpop.f32.mrf.mxu0 }
 0x1c8   :  { %v494_v59 = vadd.f32 %v787_v55, %v493_v57 }
 0x1ca   :  { %v532_v60 = vmax.f32 %v494_v59, 0.0 }
 0x1cc   :  { %v684_v61 = vpack.c.bf16 %v532_v60, %v531_v58 }
 0x1ce   :  { %685 = vst [vmem:[#allocation8] sm:$0xff] %v684_v61  }
 0x1dc   :  { %v521_v62 = vpop.f32.mrf.mxu3 }
 0x1dd   :  { %v511_v63 = vpop.f32.mrf.mxu2  ;;  %v522_v1 = vadd.f32 %v787_v55, %v521_v62 }
 0x1de   :  { %v512_v2 = vadd.f32 %v787_v55, %v511_v63 }
 0x1df   :  { %v501_v0 = vpop.f32.mrf.mxu1  ;;  %v543_v8 = vmax.f32 %v522_v1, 0.0 }
 0x1e0   :  { %v502_v6 = vadd.f32 %v787_v55, %v501_v0  ;;  %v539_v11 = vmax.f32 %v512_v2, 0.0 }
 0x1e2   :  { %v535_v15 = vmax.f32 %v502_v6, 0.0 }
 0x1e4   :  { %v523_v3 = vpop.f32.mrf.mxu3 }
 0x1e5   :  { %v513_v4 = vpop.f32.mrf.mxu2  ;;  %v524_v5 = vadd.f32 %v787_v55, %v523_v3 }
 0x1e6   :  { %v514_v7 = vadd.f32 %v787_v55, %v513_v4 }
 0x1e7   :  { %v544_v9 = vmax.f32 %v524_v5, 0.0  ;;  %v503_v10 = vpop.f32.mrf.mxu1 }
 0x1e8   :  { %v540_v12 = vmax.f32 %v514_v7, 0.0  ;;  %v504_v13 = vadd.f32 %v787_v55, %v503_v10 }
 0x1e9   :  { %v714_v14 = vpack.c.bf16 %v544_v9, %v543_v8 }
 0x1ea   :  { %v704_v16 = vpack.c.bf16 %v540_v12, %v539_v11  ;;  %v536_v17 = vmax.f32 %v504_v13, 0.0 }
 0x1eb   :  { %726 = vst [vmem:[#allocation8 + $0x30] sm:$0xff] %v714_v14  }
 0x1ec   :  { %724 = vst [vmem:[#allocation8 + $0x20] sm:$0xff] %v704_v16   ;;  %v694_v18 = vpack.c.bf16 %v536_v17, %v535_v15  ;;  %v526_v19 = vpop.f32.mrf.mxu3 }
 0x1ed   :  { %v516_v20 = vpop.f32.mrf.mxu2  ;;  %v527_v22 = vadd.f32 %v787_v55, %v526_v19 }
 0x1ee   :  { %722 = vst [vmem:[#allocation8 + $0x10] sm:$0xff] %v694_v18   ;;  %v517_v23 = vadd.f32 %v787_v55, %v516_v20 }
 0x1ef   :  { %v496_v21 = vpop.f32.mrf.mxu0  ;;  %v545_v29 = vmax.f32 %v527_v22, 0.0 }
 0x1f0   :  { %v497_v27 = vadd.f32 %v787_v55, %v496_v21  ;;  %v541_v33 = vmax.f32 %v517_v23, 0.0 }
 0x1f2   :  { %v533_v37 = vmax.f32 %v497_v27, 0.0 }
 0x1f4   :  { %v528_v24 = vpop.f32.mrf.mxu3 }
 0x1f5   :  { %v518_v25 = vpop.f32.mrf.mxu2  ;;  %v529_v26 = vadd.f32 %v787_v55, %v528_v24 }
 0x1f6   :  { %v519_v28 = vadd.f32 %v787_v55, %v518_v25 }
 0x1f7   :  { %v546_v30 = vmax.f32 %v529_v26, 0.0  ;;  %v498_v31 = vpop.f32.mrf.mxu0  ;;  %v506_v32 = vpop.f32.mrf.mxu1 }
 0x1f8   :  { %v542_v34 = vmax.f32 %v519_v28, 0.0  ;;  %v499_v35 = vadd.f32 %v787_v55, %v498_v31  ;;  %v507_v41 = vadd.f32 %v787_v55, %v506_v32 }
 0x1f9   :  { %v719_v36 = vpack.c.bf16 %v546_v30, %v545_v29 }
 0x1fa   :  { %v709_v38 = vpack.c.bf16 %v542_v34, %v541_v33  ;;  %v534_v39 = vmax.f32 %v499_v35, 0.0  ;;  %v537_v44 = vmax.f32 %v507_v41, 0.0 }
 0x1fb   :  { %727 = vst [vmem:[#allocation8 + $0x38] sm:$0xff] %v719_v36  }
 0x1fc   :  { %725 = vst [vmem:[#allocation8 + $0x28] sm:$0xff] %v709_v38   ;;  %v689_v40 = vpack.c.bf16 %v534_v39, %v533_v37 }
 0x1fe   :  { %721 = vst [vmem:[#allocation8 + $0x8] sm:$0xff] %v689_v40  }
 0x1ff   :  { %v508_v42 = vpop.f32.mrf.mxu1 }
 0x200   :  { %v509_v43 = vadd.f32 %v787_v55, %v508_v42 }
 0x202   :  { %v538_v45 = vmax.f32 %v509_v43, 0.0 }
 0x204   :  { %v699_v46 = vpack.c.bf16 %v538_v45, %v537_v44 }
 0x206   :  { %723 = vst [vmem:[#allocation8 + $0x18] sm:$0xff] %v699_v46  }
 0x207   :  { %591 = dma.vmem_to_hbm [thread:$0]  %s584_s14, 1024, %s586_s17, [#allocation7], %s846_s18, %s846_s18, %s847_s19  }
 0x208   :  { %838 = dma.done.wait [#allocation7], 1024  }
 0x209   :  { %839 = vsyncadd [#allocation7], 4294966272 }
 0x20a   :  { %596 = vsyncpa [#allocation6], 1 }
 0x20b   :  { %597 = vsyncpa [#allocation7], 1 }

</bundles_post_ra>
